<compile_context>
chip_gen: v7x
topology: tpu7x:2x2x1
jax: 0.10.0
libtpu: 0.0.40
codegen_flags: <defaults>
</compile_context>

<pallas_src>
import jax
import jax.numpy as jnp
from jax.experimental import pallas as pl
from jax.experimental.pallas import tpu as pltpu


def _avgpool2d_k2_s1_p1_kernel(x_ref, o_ref):
    """Fused zero-pad + 2x2 / stride-1 average pool over a block of channels.

    x_ref: (CB, H, W)       un-padded input block (batch dim squeezed away)
    o_ref: (CB, H+1, W+1)   pooled output block
    """
    CB, H, W = x_ref.shape
    _, Ho, Wo = o_ref.shape                      # Ho = H + 1, Wo = W + 1
    Hp = ((Ho + 7) // 8) * 8                     # sublane-aligned working height
    LANE = ((Wo + 127) // 128) * 128             # lane-dense working width

    # Build the implicitly zero-padded operand in registers (no VMEM scratch,
    # no whole-scratch zero / store / reload round trip).  The input occupies
    # rows 0..H-1 and lanes 0..W-1; the trailing rows / lanes are the zero
    # padding that the roll-wrap below relies on.
    x = x_ref[...].astype(jnp.float32)
    xp = jnp.concatenate(
        [x, jnp.zeros((CB, H, LANE - W), jnp.float32)], axis=2)
    xp = jnp.concatenate(
        [xp, jnp.zeros((CB, Hp - H, LANE), jnp.float32)], axis=1)

    # Separable 2x2 pool; both shifts are XLU rotations (tile-aligned, the
    # wrapping lane / row is always a zero-pad lane / row):
    #   rw[r, l] = pad[r+1, l+1] + pad[r+1, l]
    rw = xp + pltpu.roll(xp, shift=1, axis=2)
    #   sv[r, l] = rw[r, l] + rw[r-1, l] = 4 * out[r, l]
    sv = rw + pltpu.roll(rw, shift=1, axis=1)

    # count_include_pad=True (PyTorch default) -> divisor is always 4.
    # Wo is far from a lane multiple, but at these sizes the kernel is
    # fixed-overhead bound, so the single-op (non lane-padded) output store
    # is the right trade (conditional optimization per the perf review).
    o_ref[...] = (sv[:, :Ho, :Wo] * 0.25).astype(o_ref.dtype)


def my_model_forward(x, channels_per_step=None):
    """MyModel.forward: AvgPool2d(2, 1, (1, 1))(x)[0].

    x: (N, C, H, W).  Returns (C, H+1, W+1), dtype of x.
    """
    N, C, H, W = x.shape
    Ho, Wo = H + 1, W + 1

    if channels_per_step is None:
        # Two grid steps when C is even (so "parallel" can shard across
        # v7x's two TensorCores); otherwise collapse to a single step.
        # Either way far fewer fixed-overhead steps than a per-channel grid.
        channels_per_step = C if (C < 2 or C % 2 != 0) else C // 2
    CB = channels_per_step
    assert C % CB == 0, "channels_per_step must divide C"
    n_steps = C // CB

    return pl.pallas_call(
        _avgpool2d_k2_s1_p1_kernel,
        out_shape=jax.ShapeDtypeStruct((C, Ho, Wo), x.dtype),
        grid=(n_steps,),
        in_specs=[
            # Squeezed batch dim (None): only (batch 0, channels
            # c*CB:(c+1)*CB) is DMA'd -- the batch-0 select is fused, and the
            # channel slab is contiguous in HBM (one linear DMA per step).
            pl.BlockSpec((None, CB, H, W), lambda c: (0, c, 0, 0)),
        ],
        out_specs=pl.BlockSpec((CB, Ho, Wo), lambda c: (c, 0, 0)),
        compiler_params=pltpu.CompilerParams(
            dimension_semantics=("parallel",)),
        # TODO(synk): for very large H/W, additionally tile rows (TH multiple
        # of 8 with a 1-row halo) and size TH off the per-chip VMEM budget
        # (64 MiB on v7x vs 128 MiB on v5e/v6e).
    )(x)


if __name__ == "__main__":
    key = jax.random.PRNGKey(0)
    x = jax.random.normal(key, (2, 4, 16, 16), dtype=jnp.float32)

    out = my_model_forward(x)
    out = jax.block_until_ready(out)

    # Reference in plain JAX (count_include_pad=True -> divisor always 4).
    x0p = jnp.pad(x[0], ((0, 0), (1, 1), (1, 1)))
    ref = 0.25 * (x0p[:, :-1, :-1] + x0p[:, 1:, :-1]
                  + x0p[:, :-1, 1:] + x0p[:, 1:, 1:])
    assert out.shape == (4, 17, 17), out.shape
    assert jnp.allclose(out, ref, atol=1e-5, rtol=1e-5), "mismatch vs reference"

    print("KERNEL_OK")
</pallas_src>

<mosaic_0001>
module attributes {stable_mosaic.version = 11 : i64} {
  func.func @_avgpool2d_k2_s1_p1_kernel(%arg0: i32, %arg1: memref<1x2x16x16xf32, #tpu.memory_space<vmem>>, %arg2: memref<2x17x17xf32, #tpu.memory_space<vmem>>) attributes {dimension_semantics = [#tpu.dimension_semantics<parallel>], iteration_bounds = array<i64: 2>, scalar_prefetch = 0 : i64, scratch_operands = 0 : i64, tpu.core_type = #tpu.core_type<tc>, window_params = [{transform_indices = @transform_0, window_bounds = array<i64: 1, 2, 16, 16>}, {transform_indices = @transform_1, window_bounds = array<i64: 2, 17, 17>}]} {
    %c0 = arith.constant 0 : index
    %c0_0 = arith.constant 0 : index
    %c0_1 = arith.constant 0 : index
    %c0_2 = arith.constant 0 : index
    %0 = vector.load %arg1[%c0, %c0_0, %c0_1, %c0_2] : memref<1x2x16x16xf32, #tpu.memory_space<vmem>>, vector<1x2x16x16xf32>
    %1 = vector.shape_cast %0 : vector<1x2x16x16xf32> to vector<2x16x16xf32>
    %cst = arith.constant 0.000000e+00 : f32
    %2 = vector.broadcast %cst : f32 to vector<2x16x112xf32>
    %3 = tpu.concatenate %1, %2 in 2 : vector<2x16x16xf32>, vector<2x16x112xf32> -> vector<2x16x128xf32>
    %cst_3 = arith.constant 0.000000e+00 : f32
    %4 = vector.broadcast %cst_3 : f32 to vector<2x8x128xf32>
    %5 = tpu.concatenate %3, %4 in 1 : vector<2x16x128xf32>, vector<2x8x128xf32> -> vector<2x24x128xf32>
    %c1_i32 = arith.constant 1 : i32
    %6 = tpu.dynamic_rotate %5 by %c1_i32 dim 2 : vector<2x24x128xf32>, i32 -> vector<2x24x128xf32>
    %7 = arith.addf %5, %6 : vector<2x24x128xf32>
    %c1_i32_4 = arith.constant 1 : i32
    %8 = tpu.dynamic_rotate %7 by %c1_i32_4 dim 1 : vector<2x24x128xf32>, i32 -> vector<2x24x128xf32>
    %9 = arith.addf %7, %8 : vector<2x24x128xf32>
    %10 = vector.extract_strided_slice %9 {offsets = [0, 0, 0], sizes = [2, 17, 17], strides = [1, 1, 1]} : vector<2x24x128xf32> to vector<2x17x17xf32>
    %cst_5 = arith.constant 2.500000e-01 : f32
    %11 = vector.broadcast %cst_5 : f32 to vector<2x17x17xf32>
    %12 = arith.mulf %10, %11 : vector<2x17x17xf32>
    %c0_6 = arith.constant 0 : index
    %c0_7 = arith.constant 0 : index
    %c0_8 = arith.constant 0 : index
    %13 = vector.load %arg2[%c0_6, %c0_7, %c0_8] : memref<2x17x17xf32, #tpu.memory_space<vmem>>, vector<2x17x17xf32>
    tpu.vector_store %arg2[%c0_6, %c0_7, %c0_8], %12 {strides = array<i32>} : memref<2x17x17xf32, #tpu.memory_space<vmem>>, vector<2x17x17xf32>,
    return
  }
  func.func @transform_0(%arg0: i32) -> (i32, i32, i32, i32) {
    %c0_i32 = arith.constant 0 : i32
    %c0_i32_0 = arith.constant 0 : i32
    %c0_i32_1 = arith.constant 0 : i32
    %c0_i32_2 = arith.constant 0 : i32
    return %c0_i32, %arg0, %c0_i32_0, %c0_i32_1 : i32, i32, i32, i32
  }
  func.func @transform_1(%arg0: i32) -> (i32, i32, i32) {
    %c0_i32 = arith.constant 0 : i32
    %c0_i32_0 = arith.constant 0 : i32
    %c0_i32_1 = arith.constant 0 : i32
    return %arg0, %c0_i32, %c0_i32_0 : i32, i32, i32
  }
}

</mosaic_0001>

<bundles_post_ra>
// kernel: tpu_custom_call.1
= control target key start
LH: loop header
LB: loop body
LE: loop exit
PB: predicated region body
PF: predicated region fallthrough
CT: control target
= control target key end

     0   :  { %6 = vsyncpa [#allocation3], 0  ;;  %s527_s0 = inlined_call_operand.hbm [shape: f32[2,4,16,16], index: 0, kind: input, shape index: {}]   ;;  %s528_s1 = inlined_call_operand.vmem [shape: f32[4,17,17], index: 1, kind: output, shape index: {}]  }
   0x1   :  { %8 = vsyncpa [#allocation3 + $0x1], 0  ;;  %s410_s6 = smov 0   ;;  %s412_s7 = smov 0  }
   0x2   :  { %s414_s8 = smov 0   ;;  %s416_s9 = smov 0  }
   0x3 LB: > { %s269_s10 = sadd.s32 4294967295, %s393_s9   ;;  %s430_s11 = sadd.s32 1, %s393_s9   ;;  %s393_s9 = sphi %s416_s9, %s535_s9   ;;  %s389_s8 = sphi %s414_s8, %s534_s8   ;;  %s385_s7 = sphi %s412_s7, %s533_s7   ;;  %s381_s6 = sphi %s410_s6, %s532_s6  }
   0x4   : > { %s18_s12 = ssub.s32 %s393_s9, %s430_s11  ;;  %s21_s13 = sadd.s32 1, %s389_s8 }
   0x5   : > { %p19_p0 = scmp.eq.s32.totalorder %s18_s12, 0  ;;  %p28_p1 = scmp.ne.s32.totalorder %s389_s8, %s385_s7 }
   0x6   : > { %p29_p2 = scmp.eq.s32.totalorder %s393_s9, 0  ;;  %p34_p3 = scmp.ne.s32.totalorder %s385_s7, %s381_s6 }
   0x7   : > { %s440_s14 = scalar_select %p19_p0, %s389_s8, %s21_s13  }
   0x8   : > { %p30_p4 = por %p29_p2, %p28_p1  ;;  %p35_p5 = scmp.eq.s32.totalorder %s269_s10, 0 }
   0x9   : > { %p292_p6 = scmp.lt.s32.totalorder %s393_s9, 2  ;;  %s84_s16 = sand.u32 1, %s389_s8  }
   0xa   : > { %p445_p7 = por %p35_p5, %p34_p3  ;;  %s273_s17 = sshll.u32 %s84_s16, 5 }
   0xb   : > { %s284_s18 = sshll.u32 %s393_s9, 9  ;;  %s88_s22 = scalar_lea.vmem [#allocation2], %s273_s17 }
   0xc   : > { %s454_s21 = scalar_lea.hbm %s527_s0, %s284_s18  ;;  %s96_s23 = sshll.u32 %s88_s22, 4  ;;  %s456_s23 = int_to_ptr.vmem [resolvable:$true] %s96_s23 }
   0xd   : > { %p458_p8 = pnand %p292_p6, %p30_p4  ;;  %s463_s25 = scalar_lea.sflag [#allocation3], %s84_s16 }
   0xe   : > { %s329_s26 = scalar_lea.hbm %s454_s21, 512  ;;  %s334_s29 = scalar_lea.hbm %s527_s0, 2048 }
   0xf   : > { %p330_p10 = scmp.ne.s32.totalorder %s454_s21, %s329_s26  ;;  %p331_p11 = pneg %p458_p8 }
  0x10   : > { %p335_p0 = scmp.lt.u32.totalorder %s454_s21, %s527_s0  ;;  %p336_p1 = scmp.lt.u32.totalorder %s334_s29, %s329_s26 }
  0x11   : > { %p332_p12 = pnand %p331_p11, %p330_p10  ;;  %p338_p3 = scmp.lt.u32.totalorder %s329_s26, %s454_s21 }
  0x12   : > { %p337_p2 = por %p336_p1, %p335_p0 }
  0x13   : > { %p333_p13 = pneg %p332_p12 }
  0x14   : > { %p339_p4 = por %p338_p3, %p337_p2 }
  0x16   : > { %p340_p5 = pnand %p339_p4, %p333_p13 }
  0x18   : > { %343 = shalt.err (!%p340_p5)
}
  0x19   : > { %s344_s3 = scalar_lea.vmem %s456_s23, 512  ;;  %s395_s4 = smov [#allocation2]  }
  0x1a   : > { %p345_p6 = scmp.ne.s32.totalorder %s456_s23, %s344_s3  ;;  %s349_s5 = sshll.u32 %s395_s4, 4  ;;  %s350_s5 = int_to_ptr.vmem [resolvable:$false] %s349_s5 }
  0x1b   : > { %s351_s6 = scalar_lea.vmem %s350_s5, 1024  ;;  %p352_p9 = scmp.lt.s32.totalorder %s456_s23, %s350_s5 }
  0x1c   : > { %p347_p10 = pnand %p345_p6, %p331_p11  ;;  %p353_p0 = scmp.lt.s32.totalorder %s351_s6, %s344_s3 }
  0x1e   : > { %p348_p12 = pneg %p347_p10  ;;  %p354_p1 = por %p353_p0, %p352_p9 }
  0x20   : > { %p355_p2 = pnand %p354_p1, %p348_p12 }
  0x22   : > { %358 = shalt.err (!%p355_p2)
}
  0x23   : > { %s396_s12 = smov 128   ;;  %s397_s13 = smov 8  }
  0x24   : > { %291 = dma.hbm_to_vmem [thread:$0]  (!%p458_p8), %s454_s21, 512, %s456_s23, %s463_s25, %s396_s12, %s396_s12, %s397_s13  }
  0x25   : > { %p104_p11 = scmp.lt.s32.totalorder %s393_s9, 3  ;;  %p531_p13 = scmp.ge.s32.totalorder %s393_s9, 1 }
  0x27   : > { %p105_p3 = pnand %p531_p13, %p104_p11 }
  0x28   : > { %s110_s16 = sand.u32 (!%p105_p3), 1, %s385_s7  }
  0x29   : > { %108 = sbr.rel (%p105_p3) target bundleno = 184 (0xb8), region = 24  ;;  %s278_s17 = sshll.u32 (!%p105_p3), %s110_s16, 5 }
  0x2a   : > { %s111_s18 = scalar_lea.sflag (!%p105_p3), [#allocation3], %s110_s16  ;;  %s114_s19 = scalar_lea.vmem (!%p105_p3), [#allocation2], %s278_s17 }
  0x30   : > { %376 = dma.done.wait (%p445_p7), %s111_s18, 512  }
  0x31   : > { %378 = vsyncadd (%p445_p7), %s111_s18, 4294966784  ;;  %vm146_vm0 = vcmask 130048   ;;  %v144_v0 = vld [vmem:[%s114_s19 + $0x10] sm:$0xff]  ;;  %v142_v1 = vld [vmem:[%s114_s19] sm:$0xff]  ;;  %s398_s20 = smov 1   ;;  %v399_v8 = vmov 0.0   ;;  %v171_v9 = vlaneseq }
  0x32   : > { %v145_v2 = vld [vmem:[%s114_s19 + $0x18] sm:$0xff]  ;;  %v149_v3 = vsel %vm146_vm0, %v144_v0, 0.0  ;;  %v147_v4 = vsel %vm146_vm0, %v142_v1, 0.0  ;;  %v143_v5 = vld [vmem:[%s114_s19 + $0x8] sm:$0xff]  ;;  %s279_s15 = sshll.u32 %s269_s10, 1  ;;  %vm192_vm2 = vcmask 138240  }
  0x33   : > { %157 = vrot.lane.b32.xlu1 %v149_v3, %s398_s20  ;;  %151 = vrot.lane.b32.xlu0 %v147_v4, %s398_s20  ;;  %v150_v6 = vsel %vm146_vm0, %v145_v2, 0.0  ;;  %v148_v7 = vsel %vm146_vm0, %v143_v5, 0.0  ;;  %p136_p7 = scmp.lt.s32.totalorder %s279_s15, 3  ;;  %v172_v13 = vshrl.u32 %v171_v9, 7  ;;  %vm195_vm3 = vcmask 131072  }
  0x35   : > { %s537_s15 = smov (!%p136_p7, %s279_s15), 3  ;;  %vm173_vm1 = vcmp.lt.s32.totalorder %v172_v13, 1 }
  0x36   : > { %s285_s21 = smul.u32 24, %s537_s15 }
  0x37   : > { %159 = vrot.lane.b32.xlu1 %v150_v6, %s398_s20  ;;  %153 = vrot.lane.b32.xlu0 %v148_v7, %s398_s20 }
  0x38   : > { %s140_s22 = scalar_lea.vmem %s528_s1, %s285_s21 }
  0x3b   : > { %155 = vrot.lane.b32.xlu0 %v399_v8, %s398_s20 }
  0xa5   : > { %v158_v10 = vpop.permute.xlu1 %157  ;;  %v152_v11 = vpop.permute.xlu0 %151 }
  0xa6   : > { %v164_v12 = vadd.f32 %v158_v10, %v149_v3  ;;  %v161_v14 = vadd.f32 %v152_v11, %v147_v4 }
  0xa8   : > { %v167_v17 = vrot.slane %v164_v12, 7  ;;  %v166_v20 = vrot.slane %v161_v14, 7 }
  0xa9   : > { %v160_v15 = vpop.permute.xlu1 %159  ;;  %v154_v16 = vpop.permute.xlu0 %153 }
  0xaa   : > { %v165_v18 = vadd.f32 %v160_v15, %v150_v6  ;;  %v162_v19 = vadd.f32 %v154_v16, %v148_v7 }
  0xac   : > { %v169_v21 = vrot.slane %v165_v18, 7  ;;  %v168_v22 = vrot.slane %v162_v19, 7 }
  0xad   : > { %v156_v23 = vpop.permute.xlu0 %155 }
  0xae   : > { %v177_v24 = vsel %vm173_vm1, %v167_v17, %v169_v21  ;;  %v176_v25 = vsel %vm173_vm1, %v166_v20, %v168_v22  ;;  %v170_v26 = vrot.slane %v156_v23, 7 }
  0xaf   : > { %v184_v27 = vadd.f32 %v177_v24, %v165_v18  ;;  %v181_v28 = vadd.f32 %v176_v25, %v162_v19 }
  0xb0   : > { %v174_v29 = vsel %vm173_vm1, %v168_v22, %v170_v26  ;;  %v175_v30 = vsel %vm173_vm1, %v169_v21, %v170_v26  ;;  %v178_v31 = vsel %vm173_vm1, %v170_v26, %v166_v20  ;;  %v179_v32 = vsel %vm173_vm1, %v170_v26, %v167_v17 }
  0xb1   : > { %v190_v33 = vmul.f32 0.25, %v184_v27  ;;  %v187_v34 = vmul.f32 0.25, %v181_v28  ;;  %v180_v35 = vadd.f32 %v178_v31, %v161_v14  ;;  %v182_v36 = vadd.f32 %v174_v29, %v156_v23 }
  0xb2   : > { %v183_v37 = vadd.f32 %v179_v32, %v164_v12  ;;  %v185_v38 = vadd.f32 %v175_v30, %v156_v23 }
  0xb3   : > { %194 = vst.msk [vmem:[%s140_s22 + $0x8] sm:$0xff] %vm192_vm2, %v187_v34  ;;  %v186_v39 = vmul.f32 0.25, %v180_v35  ;;  %v188_v40 = vmul.f32 0.25, %v182_v36  ;;  %198 = vst.msk [vmem:[%s140_s22 + $0x20] sm:$0xff] %vm192_vm2, %v190_v33 }
  0xb4   : > { %v189_v41 = vmul.f32 0.25, %v183_v37  ;;  %v191_v42 = vmul.f32 0.25, %v185_v38 }
  0xb5   : > { %193 = vst.msk [vmem:[%s140_s22] sm:$0xff] %vm192_vm2, %v186_v39 }
  0xb6   : > { %196 = vst.msk [vmem:[%s140_s22 + $0x10] sm:$0x1] %vm195_vm3, %v188_v40  ;;  %199 = vst.msk [vmem:[%s140_s22 + $0x28] sm:$0x1] %vm195_vm3, %v191_v42 }
  0xb7   : > { %197 = vst.msk [vmem:[%s140_s22 + $0x18] sm:$0xff] %vm192_vm2, %v189_v41 }
  0xb8 PF: > { %p11_p8 = scmp.ge.s32.totalorder %s430_s11, 4   ;;  %s532_s6 = smov %s385_s7 }
  0xb9   : > { %s533_s7 = smov %s389_s8  ;;  %s534_s8 = smov %s440_s14 }
  0xba   : > { %s535_s9 = smov %s430_s11  ;;  %13 = sbr.rel (!%p11_p8) target bundleno = 3 (0x3), region = 64 }
  0xc1   :  { %224 = vsyncpa [#allocation3], 1 }
  0xc2   :  { %226 = vsyncpa [#allocation3 + $0x1], 1 }

</bundles_post_ra>
